<compile_context>
chip_gen: v7x
topology: tpu7x:2x2x1
jax: 0.10.0
libtpu: 0.0.40
codegen_flags: <defaults>
</compile_context>

<pallas_src>
import functools

import jax
import jax.numpy as jnp
from jax.experimental import pallas as pl
from jax.experimental.pallas import tpu as pltpu

RRELU_SLOPE = (1.0 / 8.0 + 1.0 / 3.0) / 2.0  # nn.RReLU eval-mode negative slope


def _rrelu(x):
    return jnp.where(x >= 0, x, RRELU_SLOPE * x)


def _round_up(n, m):
    return ((n + m - 1) // m) * m


def kqv_attention_kernel(len_ref,             # (TB, 1) int32
                         x_ref,               # (TB, T, D_in) bf16
                         wkqv_ref, bkqv_ref,  # (D_in, 3*Hs) bf16, (1, 3*Hs) f32
                         wo_ref, bo_ref,      # (Hs, Dp) bf16, (1, Dp) f32
                         o_ref,               # (TB, Dp) f32
                         *, inv_scale, bf16_inner):
    TB, T, D_in = x_ref.shape
    Hs = wo_ref.shape[0]  # per-slot (k/q/v) width, padded to a multiple of 128

    # Single fused, lane-dense K|Q|V projection over all TB*T timesteps (MXU).
    x2d = x_ref[...].reshape(TB * T, D_in)
    proj = jnp.dot(x2d, wkqv_ref[...], preferred_element_type=jnp.float32)
    proj = _rrelu(proj + bkqv_ref[...])                 # (TB*T, 3*Hs) f32
    proj3 = proj.reshape(TB, T, 3 * Hs)                 # layout-preserving reshape

    # Length mask and last-timestep selector share one iota.
    # NOTE: zero-length sequences are clamped to length 1 (the PyTorch path is
    # undefined/NaN for them); padded batch rows use length 1 and are discarded.
    lengths = jnp.maximum(len_ref[...], 1)              # (TB, 1)
    t_iota = jax.lax.broadcasted_iota(jnp.int32, (TB, T), 1)
    valid = t_iota < lengths                            # (TB, T)

    # q = projection at the last valid timestep; 1/sqrt(hidden) folded into the
    # (TB, T) selector so it is applied once on the small tensor.
    last_sel = (t_iota == (lengths - 1)).astype(jnp.float32) * inv_scale
    q = jnp.sum(proj3[:, :, Hs:2 * Hs] * last_sel[:, :, None], axis=1)  # (TB, Hs)

    # Masked softmax over the sequence axis.  Padded positions are excluded by
    # the -inf mask, so no explicit zeroing of k/v rows is needed (their padded
    # lanes are exactly zero because the padded weight/bias columns are zero).
    k3 = proj3[:, :, 0:Hs]                              # whole-tile lane select
    if bf16_inner:
        k3 = k3.astype(jnp.bfloat16)
        q = q.astype(jnp.bfloat16)
    logits = jnp.sum(q[:, None, :] * k3, axis=-1, dtype=jnp.float32)    # (TB, T)
    logits = jnp.where(valid, logits, -jnp.inf)
    m = jnp.max(logits, axis=-1, keepdims=True)
    e = jnp.exp(logits - m)
    attn = e * pl.reciprocal(jnp.sum(e, axis=-1, keepdims=True), approx=True)

    v3 = proj3[:, :, 2 * Hs:3 * Hs]                     # whole-tile lane select
    if bf16_inner:
        v3 = v3.astype(jnp.bfloat16)
        attn = attn.astype(jnp.bfloat16)
    ctx = jnp.sum(attn[:, :, None] * v3, axis=1, dtype=jnp.float32)     # (TB, Hs)

    # Output projection: bf16 MXU matmul, f32 bias + RReLU, lane-dense store.
    out = _rrelu(jnp.dot(ctx.astype(jnp.bfloat16), wo_ref[...],
                         preferred_element_type=jnp.float32) + bo_ref[...])
    o_ref[...] = out.astype(o_ref.dtype)


def kqv_attention(x, lengths, params, *, block_b=512, bf16_intermediates=None):
    """x: (B, T, D_in) f32 padded, lengths: (B,) int32, params: dict of weights."""
    B, T, D_in = x.shape
    H = params["wk"].shape[1]
    D_out = params["wo"].shape[1]

    if bf16_intermediates is None:
        # bf16 elementwise temps only where the VPU is bf16-native (v6e / v7x).
        try:
            kind = jax.devices()[0].device_kind.lower()
        except Exception:  # pragma: no cover
            kind = ""
        bf16_intermediates = not any(t in kind for t in ("v2", "v3", "v4", "v5"))

    Hs = _round_up(H, 128)        # per-slot padded width (tile-aligned slices)
    Dp = _round_up(D_out, 128)    # lane-dense output width

    def pad_cols(w, width):
        return jnp.pad(w, ((0, 0), (0, width - w.shape[1])))

    # Fused K|Q|V projection; each slot zero-padded to whole 128-lane tiles.
    w_kqv = jnp.concatenate(
        [pad_cols(params["wk"], Hs),
         pad_cols(params["wq"], Hs),
         pad_cols(params["wv"], Hs)], axis=1).astype(jnp.bfloat16)
    b_kqv = jnp.concatenate(
        [pad_cols(params["bk"], Hs),
         pad_cols(params["bq"], Hs),
         pad_cols(params["bv"], Hs)], axis=1).astype(jnp.float32)

    # Output projection: rows padded H->Hs (ctx has Hs lanes), columns padded
    # D_out->Dp so both the matmul N-block and the output store are lane-dense.
    wo = jnp.pad(params["wo"], ((0, Hs - H), (0, Dp - D_out))).astype(jnp.bfloat16)
    bo = jnp.pad(params["bo"], ((0, 0), (0, Dp - D_out))).astype(jnp.float32)

    # Batch TB items per grid step; guarantee >= 2 grid steps so the "parallel"
    # batch axis can be sharded across both TensorCores on v7x.  Padded items
    # get length 1 and zero inputs and are sliced off at the end.
    TB = min(block_b, max(8, _round_up(pl.cdiv(B, 2), 8)))
    B_pad = max(_round_up(B, TB), 2 * TB)

    x_bf = x.astype(jnp.bfloat16)
    lengths = lengths.astype(jnp.int32)
    if B_pad > B:
        x_bf = jnp.pad(x_bf, ((0, B_pad - B), (0, 0), (0, 0)))
        lengths = jnp.pad(lengths, (0, B_pad - B), constant_values=1)
    len2d = lengths.reshape(B_pad, 1)

    kernel = functools.partial(
        kqv_attention_kernel,
        inv_scale=1.0 / (float(H) ** 0.5),
        bf16_inner=bool(bf16_intermediates),
    )

    grid_spec = pltpu.PrefetchScalarGridSpec(
        num_scalar_prefetch=0,
        grid=(B_pad // TB,),
        in_specs=[
            pl.BlockSpec((TB, 1), lambda g: (g, 0)),
            pl.BlockSpec((TB, T, D_in), lambda g: (g, 0, 0)),
            pl.BlockSpec((D_in, 3 * Hs), lambda g: (0, 0)),
            pl.BlockSpec((1, 3 * Hs), lambda g: (0, 0)),
            pl.BlockSpec((Hs, Dp), lambda g: (0, 0)),
            pl.BlockSpec((1, Dp), lambda g: (0, 0)),
        ],
        out_specs=pl.BlockSpec((TB, Dp), lambda g: (g, 0)),
    )
    out = pl.pallas_call(
        kernel,
        grid_spec=grid_spec,
        out_shape=jax.ShapeDtypeStruct((B_pad, Dp), jnp.float32),
        compiler_params=pltpu.CompilerParams(
            dimension_semantics=("parallel",),
            vmem_limit_bytes=48 * 1024 * 1024,
        ),
    )(len2d, x_bf, w_kqv, b_kqv, wo, bo)
    return out[:B, :D_out]


def _reference(x, lengths, p):
    """Pure-JAX reference mirroring the PyTorch forward pass (with the same
    bf16 rounding of x and the weights as the kernel)."""
    cast = lambda a: a.astype(jnp.bfloat16).astype(jnp.float32)
    x = cast(x)
    wk, wq, wv, wo = cast(p["wk"]), cast(p["wq"]), cast(p["wv"]), cast(p["wo"])
    k = _rrelu(x @ wk + p["bk"])
    v = _rrelu(x @ wv + p["bv"])
    q_all = _rrelu(x @ wq + p["bq"])
    B, T, _ = x.shape
    H = p["wk"].shape[1]
    valid = (jnp.arange(T)[None, :] < lengths[:, None])
    k = k * valid[..., None]
    v = v * valid[..., None]
    q = q_all[jnp.arange(B), lengths - 1]                       # (B, H)
    logits = jnp.einsum("bh,bth->bt", q, k) / (H ** 0.5)
    logits = jnp.where(valid, logits, -jnp.inf)
    attn = jax.nn.softmax(logits, axis=-1)
    ctx = jnp.einsum("bt,bth->bh", attn, v)
    return _rrelu(ctx @ wo + p["bo"])


if __name__ == "__main__":
    # Small deterministic setup: ts feature dim 20, seq feature dim 12 -> in_dim 32.
    B, T = 2, 8
    d_ts, d_seq = 20, 12
    in_dim = d_ts + d_seq
    hidden = 32
    out_dim = 16

    key = jax.random.PRNGKey(0)
    k_ts, k_seq, kwk, kbk, kwq, kbq, kwv, kbv, kwo, kbo = jax.random.split(key, 10)

    ts = jax.random.normal(k_ts, (B, T, d_ts), jnp.float32)
    seq = jax.random.normal(k_seq, (B, T, d_seq), jnp.float32)
    x = jnp.concatenate([ts, seq], axis=-1)                     # packed_cat([ts, seq])
    lengths = jnp.array([T, 5], dtype=jnp.int32)
    # zero out padded timesteps (packed sequences never contain them anyway)
    x = x * (jnp.arange(T)[None, :, None] < lengths[:, None, None])

    def init_linear(kw, kb, fan_in, fan_out):
        bound = 1.0 / (fan_in ** 0.5)
        w = jax.random.uniform(kw, (fan_in, fan_out), jnp.float32, -bound, bound)
        b = jax.random.uniform(kb, (1, fan_out), jnp.float32, -bound, bound)
        return w, b

    wk, bk = init_linear(kwk, kbk, in_dim, hidden)
    wq, bq = init_linear(kwq, kbq, in_dim, hidden)
    wv, bv = init_linear(kwv, kbv, in_dim, hidden)
    wo, bo = init_linear(kwo, kbo, hidden, out_dim)
    params = dict(wk=wk, bk=bk, wq=wq, bq=bq, wv=wv, bv=bv, wo=wo, bo=bo)

    out = kqv_attention(x, lengths, params)
    out = jax.block_until_ready(out)

    ref = _reference(x, lengths, params)
    assert out.shape == (B, out_dim), out.shape
    # bf16 operands/intermediates + approx softmax reciprocal => loose tolerance.
    assert jnp.allclose(out, ref, atol=2e-2, rtol=2e-2), (out, ref)

    print("KERNEL_OK")
</pallas_src>

<mosaic_0001>
module attributes {stable_mosaic.version = 11 : i64} {
  func.func @kqv_attention_kernel(%arg0: i32, %arg1: memref<8x1xi32, #tpu.memory_space<vmem>>, %arg2: memref<8x8x32xbf16, #tpu.memory_space<vmem>>, %arg3: memref<32x384xbf16, #tpu.memory_space<vmem>>, %arg4: memref<1x384xf32, #tpu.memory_space<vmem>>, %arg5: memref<128x128xbf16, #tpu.memory_space<vmem>>, %arg6: memref<1x128xf32, #tpu.memory_space<vmem>>, %arg7: memref<8x128xf32, #tpu.memory_space<vmem>>) attributes {dimension_semantics = [#tpu.dimension_semantics<parallel>], iteration_bounds = array<i64: 2>, scalar_prefetch = 0 : i64, scratch_operands = 0 : i64, tpu.core_type = #tpu.core_type<tc>, window_params = [{transform_indices = @transform_0, window_bounds = array<i64: 8, 1>}, {transform_indices = @transform_1, window_bounds = array<i64: 8, 8, 32>}, {pipeline_mode = #tpu.pipeline_mode<synchronous>, transform_indices = @transform_2, window_bounds = array<i64: 32, 384>}, {pipeline_mode = #tpu.pipeline_mode<synchronous>, transform_indices = @transform_3, window_bounds = array<i64: 1, 384>}, {pipeline_mode = #tpu.pipeline_mode<synchronous>, transform_indices = @transform_4, window_bounds = array<i64: 128, 128>}, {pipeline_mode = #tpu.pipeline_mode<synchronous>, transform_indices = @transform_5, window_bounds = array<i64: 1, 128>}, {transform_indices = @transform_6, window_bounds = array<i64: 8, 128>}]} {
    %c0 = arith.constant 0 : index
    %c0_0 = arith.constant 0 : index
    %c0_1 = arith.constant 0 : index
    %0 = vector.load %arg2[%c0, %c0_0, %c0_1] : memref<8x8x32xbf16, #tpu.memory_space<vmem>>, vector<8x8x32xbf16>
    %1 = vector.shape_cast %0 : vector<8x8x32xbf16> to vector<64x32xbf16>
    %c0_2 = arith.constant 0 : index
    %c0_3 = arith.constant 0 : index
    %2 = vector.load %arg3[%c0_2, %c0_3] : memref<32x384xbf16, #tpu.memory_space<vmem>>, vector<32x384xbf16>
    %cst = arith.constant dense<0.000000e+00> : vector<64x384xf32>
    %3 = tpu.matmul %1, %2, %cst {dimension_numbers = #tpu.dot_dimension_numbers<[1], [0], [0], [1], [0, 0, 1, 1], [], []>} : vector<64x32xbf16>, vector<32x384xbf16>, vector<64x384xf32> -> vector<64x384xf32>
    %c0_4 = arith.constant 0 : index
    %c0_5 = arith.constant 0 : index
    %4 = vector.load %arg4[%c0_4, %c0_5] : memref<1x384xf32, #tpu.memory_space<vmem>>, vector<1x384xf32>
    %5 = vector.broadcast %4 : vector<1x384xf32> to vector<64x384xf32>
    %6 = arith.addf %3, %5 : vector<64x384xf32>
    %cst_6 = arith.constant 0.000000e+00 : f32
    %7 = vector.broadcast %cst_6 : f32 to vector<64x384xf32>
    %8 = arith.cmpf oge, %6, %7 : vector<64x384xf32>
    %cst_7 = arith.constant 0.229166672 : f32
    %9 = vector.broadcast %cst_7 : f32 to vector<64x384xf32>
    %10 = arith.mulf %9, %6 : vector<64x384xf32>
    %11 = arith.select %8, %6, %10 : vector<64x384xi1>, vector<64x384xf32>
    %12 = vector.shape_cast %11 : vector<64x384xf32> to vector<8x8x384xf32>
    %c0_8 = arith.constant 0 : index
    %c0_9 = arith.constant 0 : index
    %13 = vector.load %arg1[%c0_8, %c0_9] : memref<8x1xi32, #tpu.memory_space<vmem>>, vector<8x1xi32>
    %c1_i32 = arith.constant 1 : i32
    %14 = vector.broadcast %c1_i32 : i32 to vector<8x1xi32>
    %15 = arith.maxsi %13, %14 : vector<8x1xi32>
    %16 = tpu.iota {dimensions = array<i32: 1>} : vector<8x8xi32>
    %17 = vector.broadcast %15 : vector<8x1xi32> to vector<8x8xi32>
    %18 = arith.cmpi slt, %16, %17 : vector<8x8xi32>
    %c1_i32_10 = arith.constant 1 : i32
    %19 = vector.broadcast %c1_i32_10 : i32 to vector<8x1xi32>
    %20 = arith.subi %15, %19 : vector<8x1xi32>
    %21 = vector.broadcast %20 : vector<8x1xi32> to vector<8x8xi32>
    %22 = arith.cmpi eq, %16, %21 : vector<8x8xi32>
    %23 = arith.extui %22 : vector<8x8xi1> to vector<8x8xi32>
    %24 = arith.sitofp %23 : vector<8x8xi32> to vector<8x8xf32>
    %cst_11 = arith.constant 0.176776692 : f32
    %25 = vector.broadcast %cst_11 : f32 to vector<8x8xf32>
    %26 = arith.mulf %24, %25 : vector<8x8xf32>
    %27 = vector.extract_strided_slice %12 {offsets = [0, 0, 128], sizes = [8, 8, 128], strides = [1, 1, 1]} : vector<8x8x384xf32> to vector<8x8x128xf32>
    %28 = vector.shape_cast %26 : vector<8x8xf32> to vector<8x8x1xf32>
    %29 = vector.broadcast %28 : vector<8x8x1xf32> to vector<8x8x128xf32>
    %30 = arith.mulf %27, %29 : vector<8x8x128xf32>
    %cst_12 = arith.constant dense<0.000000e+00> : vector<8x128xf32>
    %31 = vector.multi_reduction <add>, %30, %cst_12 [1] : vector<8x8x128xf32> to vector<8x128xf32>
    %32 = vector.extract_strided_slice %12 {offsets = [0, 0, 0], sizes = [8, 8, 128], strides = [1, 1, 1]} : vector<8x8x384xf32> to vector<8x8x128xf32>
    %33 = arith.truncf %32 : vector<8x8x128xf32> to vector<8x8x128xbf16>
    %34 = arith.truncf %31 : vector<8x128xf32> to vector<8x128xbf16>
    %35 = vector.shape_cast %34 : vector<8x128xbf16> to vector<8x1x128xbf16>
    %36 = vector.broadcast %35 : vector<8x1x128xbf16> to vector<8x8x128xbf16>
    %37 = arith.mulf %36, %33 : vector<8x8x128xbf16>
    %38 = arith.extf %37 : vector<8x8x128xbf16> to vector<8x8x128xf32>
    %cst_13 = arith.constant dense<0.000000e+00> : vector<8x8xf32>
    %39 = vector.multi_reduction <add>, %38, %cst_13 [2] : vector<8x8x128xf32> to vector<8x8xf32>
    %cst_14 = arith.constant 0xFF800000 : f32
    %40 = vector.broadcast %cst_14 : f32 to vector<8x8xf32>
    %41 = arith.select %18, %39, %40 : vector<8x8xi1>, vector<8x8xf32>
    %cst_15 = arith.constant dense<0xFF800000> : vector<8xf32>
    %42 = vector.multi_reduction <maximumf>, %41, %cst_15 [1] : vector<8x8xf32> to vector<8xf32>
    %43 = vector.shape_cast %42 : vector<8xf32> to vector<8x1xf32>
    %44 = vector.broadcast %43 : vector<8x1xf32> to vector<8x8xf32>
    %45 = arith.subf %41, %44 : vector<8x8xf32>
    %46 = math.exp %45 : vector<8x8xf32>
    %cst_16 = arith.constant dense<0.000000e+00> : vector<8xf32>
    %47 = vector.multi_reduction <add>, %46, %cst_16 [1] : vector<8x8xf32> to vector<8xf32>
    %48 = vector.shape_cast %47 : vector<8xf32> to vector<8x1xf32>
    %49 = tpu.reciprocal %48 {approx = true} : vector<8x1xf32> -> vector<8x1xf32>
    %50 = vector.broadcast %49 : vector<8x1xf32> to vector<8x8xf32>
    %51 = arith.mulf %46, %50 : vector<8x8xf32>
    %52 = vector.extract_strided_slice %12 {offsets = [0, 0, 256], sizes = [8, 8, 128], strides = [1, 1, 1]} : vector<8x8x384xf32> to vector<8x8x128xf32>
    %53 = arith.truncf %52 : vector<8x8x128xf32> to vector<8x8x128xbf16>
    %54 = arith.truncf %51 : vector<8x8xf32> to vector<8x8xbf16>
    %55 = vector.shape_cast %54 : vector<8x8xbf16> to vector<8x8x1xbf16>
    %56 = vector.broadcast %55 : vector<8x8x1xbf16> to vector<8x8x128xbf16>
    %57 = arith.mulf %56, %53 : vector<8x8x128xbf16>
    %58 = arith.extf %57 : vector<8x8x128xbf16> to vector<8x8x128xf32>
    %cst_17 = arith.constant dense<0.000000e+00> : vector<8x128xf32>
    %59 = vector.multi_reduction <add>, %58, %cst_17 [1] : vector<8x8x128xf32> to vector<8x128xf32>
    %60 = arith.truncf %59 : vector<8x128xf32> to vector<8x128xbf16>
    %c0_18 = arith.constant 0 : index
    %c0_19 = arith.constant 0 : index
    %61 = vector.load %arg5[%c0_18, %c0_19] : memref<128x128xbf16, #tpu.memory_space<vmem>>, vector<128x128xbf16>
    %cst_20 = arith.constant dense<0.000000e+00> : vector<8x128xf32>
    %62 = tpu.matmul %60, %61, %cst_20 {dimension_numbers = #tpu.dot_dimension_numbers<[1], [0], [0], [1], [0, 0, 1, 1], [], []>} : vector<8x128xbf16>, vector<128x128xbf16>, vector<8x128xf32> -> vector<8x128xf32>
    %c0_21 = arith.constant 0 : index
    %c0_22 = arith.constant 0 : index
    %63 = vector.load %arg6[%c0_21, %c0_22] : memref<1x128xf32, #tpu.memory_space<vmem>>, vector<1x128xf32>
    %64 = vector.broadcast %63 : vector<1x128xf32> to vector<8x128xf32>
    %65 = arith.addf %62, %64 : vector<8x128xf32>
    %cst_23 = arith.constant 0.000000e+00 : f32
    %66 = vector.broadcast %cst_23 : f32 to vector<8x128xf32>
    %67 = arith.cmpf oge, %65, %66 : vector<8x128xf32>
    %cst_24 = arith.constant 0.229166672 : f32
    %68 = vector.broadcast %cst_24 : f32 to vector<8x128xf32>
    %69 = arith.mulf %68, %65 : vector<8x128xf32>
    %70 = arith.select %67, %65, %69 : vector<8x128xi1>, vector<8x128xf32>
    %c0_25 = arith.constant 0 : index
    %c0_26 = arith.constant 0 : index
    %71 = vector.load %arg7[%c0_25, %c0_26] : memref<8x128xf32, #tpu.memory_space<vmem>>, vector<8x128xf32>
    tpu.vector_store %arg7[%c0_25, %c0_26], %70 {strides = array<i32>} : memref<8x128xf32, #tpu.memory_space<vmem>>, vector<8x128xf32>,
    return
  }
  func.func @transform_0(%arg0: i32) -> (i32, i32) {
    %c0_i32 = arith.constant 0 : i32
    %c0_i32_0 = arith.constant 0 : i32
    return %arg0, %c0_i32 : i32, i32
  }
  func.func @transform_1(%arg0: i32) -> (i32, i32, i32) {
    %c0_i32 = arith.constant 0 : i32
    %c0_i32_0 = arith.constant 0 : i32
    %c0_i32_1 = arith.constant 0 : i32
    return %arg0, %c0_i32, %c0_i32_0 : i32, i32, i32
  }
  func.func @transform_2(%arg0: i32) -> (i32, i32) {
    %c0_i32 = arith.constant 0 : i32
    %c0_i32_0 = arith.constant 0 : i32
    %c0_i32_1 = arith.constant 0 : i32
    return %c0_i32, %c0_i32_0 : i32, i32
  }
  func.func @transform_3(%arg0: i32) -> (i32, i32) {
    %c0_i32 = arith.constant 0 : i32
    %c0_i32_0 = arith.constant 0 : i32
    %c0_i32_1 = arith.constant 0 : i32
    return %c0_i32, %c0_i32_0 : i32, i32
  }
  func.func @transform_4(%arg0: i32) -> (i32, i32) {
    %c0_i32 = arith.constant 0 : i32
    %c0_i32_0 = arith.constant 0 : i32
    %c0_i32_1 = arith.constant 0 : i32
    return %c0_i32, %c0_i32_0 : i32, i32
  }
  func.func @transform_5(%arg0: i32) -> (i32, i32) {
    %c0_i32 = arith.constant 0 : i32
    %c0_i32_0 = arith.constant 0 : i32
    %c0_i32_1 = arith.constant 0 : i32
    return %c0_i32, %c0_i32_0 : i32, i32
  }
  func.func @transform_6(%arg0: i32) -> (i32, i32) {
    %c0_i32 = arith.constant 0 : i32
    %c0_i32_0 = arith.constant 0 : i32
    return %arg0, %c0_i32 : i32, i32
  }
}

</mosaic_0001>

<bundles_post_ra>
// kernel: tpu_custom_call.1
= control target key start
LH: loop header
LB: loop body
LE: loop exit
PB: predicated region body
PF: predicated region fallthrough
CT: control target
= control target key end

     0   :  { %11 = vsyncpa [#allocation3], 0  ;;  %s2144_s0 = inlined_call_operand.vmem [shape: s32[16,1], index: 0, kind: input, shape index: {}]   ;;  %s2145_s1 = inlined_call_operand.hbm [shape: bf16[16,8,32], index: 1, kind: input, shape index: {}]   ;;  %s2146_s2 = inlined_call_operand.hbm [shape: bf16[32,384], index: 2, kind: input, shape index: {}]   ;;  %s2147_s3 = inlined_call_operand.vmem [shape: f32[1,384], index: 3, kind: input, shape index: {}]   ;;  %s2148_s4 = inlined_call_operand.hbm [shape: bf16[128,128], index: 4, kind: input, shape index: {}]   ;;  %s2149_s5 = inlined_call_operand.vmem [shape: f32[1,128], index: 5, kind: input, shape index: {}]   ;;  %s2150_s6 = inlined_call_operand.hbm [shape: f32[16,128], index: 6, kind: output, shape index: {}]  }
   0x1   :  { %13 = vsyncpa [#allocation3 + $0x1], 0 }
   0x2   :  { %14 = vsyncpa [#allocation6], 0 }
   0x3   :  { %15 = vsyncpa [#allocation4], 0 }
   0x4   :  { %17 = vsyncpa [#allocation4 + $0x1], 0  ;;  %s1667_s21 = smov 0   ;;  %s1669_s22 = smov 0  }
   0x5   :  { %s1671_s23 = smov 0   ;;  %s1673_s24 = smov 0  }
   0x6 LB: > { %s1688_s25 = sadd.s32 4294967295, %s1619_s24   ;;  %s1269_s26 = sadd.s32 4294967294, %s1619_s24   ;;  %s1619_s24 = sphi %s1673_s24, %s2170_s24   ;;  %s1615_s23 = sphi %s1671_s23, %s2169_s23   ;;  %s1611_s22 = sphi %s1669_s22, %s2168_s22   ;;  %s1607_s21 = sphi %s1667_s21, %s2167_s21  }
   0x7   : > { %p69_p0 = scmp.ne.s32.totalorder %s1611_s22, %s1607_s21  ;;  %p2151_p1 = scmp.eq.s32.totalorder %s1688_s25, 0 }
   0x8   : > { %p183_p3 = scmp.eq.s32.totalorder %s1269_s26, 1  ;;  %p1270_p5 = scmp.ge.s32.totalorder %s1619_s24, 1 }
   0x9   : > { %p1697_p4 = por %p2151_p1, %p69_p0  ;;  %p190_p7 = scmp.lt.s32.totalorder %s1619_s24, 3 }
   0xa   : > { %p1702_p6 = por %p183_p3, %p69_p0  ;;  %s1621_s30 = smov [#allocation5]  }
   0xb   : > { %s2154_s27 = scalar_select %p1697_p4, 1, 0 }
   0xc   : > { %s2155_s28 = scalar_select %p1702_p6, 1, 0 }
   0xd   : > { %p1707_p8 = pnand %p1270_p5, %p190_p7  ;;  %s202_s7 = sshll.u32 %s1621_s30, 4  ;;  %s1711_s7 = int_to_ptr.vmem [resolvable:$true] %s202_s7 }
   0xe   : > { %s1622_s9 = smov [#allocation7]   ;;  %s1463_s13 = scalar_lea.hbm %s2146_s2, 768 }
   0xf   : > { %p1376_p9 = pneg %p1707_p8  ;;  %s218_s10 = sshll.u32 %s1622_s9, 4  ;;  %s1722_s10 = int_to_ptr.vmem [resolvable:$true] %s218_s10 }
  0x10   : > { %p1464_p12 = scmp.ne.s32.totalorder %s2146_s2, %s1463_s13  ;;  %p1470_p5 = scmp.lt.u32.totalorder %s1463_s13, %s2146_s2 }
  0x11   : > { %p1718_p11 = pnand %p1376_p9, %p2151_p1 }
  0x13   : > { %p1465_p13 = pneg %p1718_p11 }
  0x15   : > { %p1466_p0 = pnand %p1465_p13, %p1464_p12 }
  0x17   : > { %p1467_p3 = pneg %p1466_p0 }
  0x19   : > { %p1472_p7 = pnand %p1470_p5, %p1467_p3 }
  0x1b   : > { %1475 = shalt.err (!%p1472_p7)
}
  0x1c   : > { %s1476_s18 = scalar_lea.vmem %s1711_s7, 768  ;;  %p1484_p2 = scmp.lt.s32.totalorder %s1711_s7, %s1711_s7 }
  0x1d   : > { %p1477_p9 = scmp.ne.s32.totalorder %s1711_s7, %s1476_s18  ;;  %p1485_p12 = scmp.lt.s32.totalorder %s1476_s18, %s1476_s18 }
  0x1f   : > { %p1479_p10 = pnand %p1477_p9, %p1465_p13  ;;  %p1486_p0 = por %p1485_p12, %p1484_p2 }
  0x21   : > { %p1480_p1 = pneg %p1479_p10 }
  0x23   : > { %p1487_p6 = pnand %p1486_p0, %p1480_p1 }
  0x25   : > { %1490 = shalt.err (!%p1487_p6)
}
  0x26   : > { %s1623_s19 = smov 192   ;;  %s1624_s20 = smov 12  }
  0x27   : > { %1379 = dma.hbm_to_vmem [thread:$0]  (!%p1718_p11), %s2146_s2, 768, %s1711_s7, [#allocation6], %s1623_s19, %s1623_s19, %s1624_s20  }
  0x28   : > { %s1491_s12 = scalar_lea.hbm %s2148_s4, 1024 }
  0x29   : > { %p1492_p2 = scmp.ne.s32.totalorder %s2148_s4, %s1491_s12  ;;  %p1498_p10 = scmp.lt.u32.totalorder %s1491_s12, %s2148_s4 }
  0x2b   : > { %p1494_p1 = pnand %p1492_p2, %p1465_p13 }
  0x2d   : > { %p1495_p6 = pneg %p1494_p1 }
  0x2f   : > { %p1500_p3 = pnand %p1498_p10, %p1495_p6 }
  0x31   : > { %1503 = shalt.err (!%p1500_p3)
}
  0x32   : > { %s1504_s7 = scalar_lea.vmem %s1722_s10, 1024  ;;  %p1512_p12 = scmp.lt.s32.totalorder %s1722_s10, %s1722_s10 }
  0x33   : > { %p1505_p5 = scmp.ne.s32.totalorder %s1722_s10, %s1504_s7  ;;  %p1513_p0 = scmp.lt.s32.totalorder %s1504_s7, %s1504_s7 }
  0x35   : > { %p1507_p7 = pnand %p1505_p5, %p1465_p13  ;;  %p1514_p2 = por %p1513_p0, %p1512_p12 }
  0x37   : > { %p1508_p9 = pneg %p1507_p7 }
  0x39   : > { %p1515_p1 = pnand %p1514_p2, %p1508_p9 }
  0x3b   : > { %1518 = shalt.err (!%p1515_p1)
}
  0x3c   : > { %s1625_s17 = smov 64   ;;  %s1626_s18 = smov 4  }
  0x3d   : > { %1382 = dma.hbm_to_vmem [thread:$0]  (!%p1718_p11), %s2148_s4, 1024, %s1722_s10, [#allocation6], %s1625_s17, %s1625_s17, %s1626_s18  }
  0x3e   : > { %s1780_s26 = sadd.s32 1, %s1619_s24   ;;  %s56_s9 = sadd.s32 1, %s1615_s23 }
  0x3f   : > { %s53_s30 = ssub.s32 %s1619_s24, %s1780_s26  ;;  %p63_p6 = scmp.ne.s32.totalorder %s1615_s23, %s1611_s22 }
  0x40   : > { %p54_p13 = scmp.eq.s32.totalorder %s53_s30, 0  ;;  %p64_p10 = scmp.eq.s32.totalorder %s1619_s24, 0 }
  0x41   : > { %p2158_p5 = scmp.eq.s32.totalorder %s1688_s25, 1  ;;  %p1393_p9 = scmp.lt.s32.totalorder %s1619_s24, 2 }
  0x42   : > { %s1789_s11 = scalar_select %p54_p13, %s1615_s23, %s56_s9  }
  0x43   : > { %p65_p3 = por %p64_p10, %p63_p6  ;;  %p1793_p7 = por %p2158_p5, %p63_p6 }
  0x44   : > { %s242_s12 = sand.u32 1, %s1615_s23   ;;  %s1316_s10 = sshll.u32 %s1619_s24, 9 }
  0x45   : > { %s2159_s8 = scalar_select %p1793_p7, 1, 0 }
  0x46   : > { %s1274_s13 = sshll.u32 %s242_s12, 5  ;;  %s1803_s16 = scalar_lea.hbm %s2145_s1, %s1316_s10 }
  0x47   : > { %s246_s7 = scalar_lea.vmem [#allocation2], %s1274_s13  ;;  %p1807_p11 = pnand %p1393_p9, %p65_p3 }
  0x48   : > { %s253_s19 = sshll.u32 %s246_s7, 4  ;;  %s1811_s30 = scalar_lea.sflag [#allocation3], %s242_s12  ;;  %s1805_s19 = int_to_ptr.vmem [resolvable:$true] %s253_s19 }
  0x49   : > { %s1519_s9 = scalar_lea.hbm %s1803_s16, 512  ;;  %p1521_p0 = pneg %p1807_p11 }
  0x4a   : > { %p1520_p12 = scmp.ne.s32.totalorder %s1803_s16, %s1519_s9  ;;  %s1524_s14 = scalar_lea.hbm %s2145_s1, 1024 }
  0x4b   : > { %p1525_p13 = scmp.lt.u32.totalorder %s1803_s16, %s2145_s1  ;;  %p1526_p6 = scmp.lt.u32.totalorder %s1524_s14, %s1519_s9 }
  0x4c   : > { %p1522_p2 = pnand %p1521_p0, %p1520_p12  ;;  %p1528_p3 = scmp.lt.u32.totalorder %s1519_s9, %s1803_s16 }
  0x4d   : > { %p1527_p10 = por %p1526_p6, %p1525_p13 }
  0x4e   : > { %p1523_p1 = pneg %p1522_p2 }
  0x4f   : > { %p1529_p5 = por %p1528_p3, %p1527_p10 }
  0x51   : > { %p1530_p9 = pnand %p1529_p5, %p1523_p1 }
  0x53   : > { %1533 = shalt.err (!%p1530_p9)
}
  0x54   : > { %s1534_s12 = scalar_lea.vmem %s1805_s19, 512  ;;  %s1627_s13 = smov [#allocation2]  }
  0x55   : > { %p1535_p12 = scmp.ne.s32.totalorder %s1805_s19, %s1534_s12  ;;  %s1539_s10 = sshll.u32 %s1627_s13, 4  ;;  %s1540_s10 = int_to_ptr.vmem [resolvable:$false] %s1539_s10 }
  0x56   : > { %s1541_s15 = scalar_lea.vmem %s1540_s10, 1024  ;;  %p1542_p4 = scmp.lt.s32.totalorder %s1805_s19, %s1540_s10 }
  0x57   : > { %p1537_p2 = pnand %p1535_p12, %p1521_p0  ;;  %p1543_p13 = scmp.lt.s32.totalorder %s1541_s15, %s1534_s12 }
  0x59   : > { %p1538_p7 = pneg %p1537_p2  ;;  %p1544_p6 = por %p1543_p13, %p1542_p4 }
  0x5b   : > { %p1545_p10 = pnand %p1544_p6, %p1538_p7 }
  0x5d   : > { %1548 = shalt.err (!%p1545_p10)
}
  0x5e   : > { %1386 = dma.hbm_to_vmem [thread:$0]  (!%p1807_p11), %s1803_s16, 512, %s1805_s19, %s1811_s30, %s1625_s17, %s1625_s17, %s1626_s18  }
  0x5f   : > { %265 = sbr.rel (%p1707_p8) target bundleno = 1254 (0x4e6), region = 44  ;;  %s1845_s9 = sand.u32 (!%p1707_p8), 1, %s1611_s22  }
  0x60   : > { %s1278_s14 = sshll.u32 (!%p1707_p8), %s1845_s9, 5  ;;  %s268_s7 = scalar_lea.sflag (!%p1707_p8), [#allocation3], %s1845_s9 }
  0x61   : > { %s1849_s12 = scalar_lea.vmem (!%p1707_p8), [#allocation2], %s1278_s14  ;;  %p2161_p4 = scmp.ne.s32.totalorder (!%p1707_p8), %s2154_s27, 0 }
  0x66   : > { %1594 = dma.done.wait (%p2161_p4), %s268_s7, 512  }
  0x67   : > { %1596 = vsyncadd (%p2161_p4), %s268_s7, 4294966784  ;;  %p2162_p7 = scmp.eq.s32.totalorder %s1688_s25, 0 }
  0x69   : > { %1598 = dma.done.wait (%p2162_p7), [#allocation6], 1792   ;;  %p2163_p8 = pmov %p2162_p7 }
  0x6a   : > { %p312_p11 = scmp.lt.s32.totalorder %s1688_s25, 1  ;;  %v1628_v0 = vmov 0   ;;  %v1439_v2 = vld [vmem:[#allocation5 + $0x4] ss:$12 sps:$4 sm:$0xff]   ;;  %v1441_v3 = vld [vmem:[#allocation5] ss:$12 sps:$4 sm:$0xff]   ;;  %v336_v13 = vlaneseq }
  0x6b   : > { %1600 = vsyncadd (%p2163_p8), [#allocation6], 4294965504  ;;  %1438 = vset.pattern.permute.xlu0 %v1628_v0  ;;  %448 = vmatprep.mubr.bf16.mxu0 %v1628_v0  ;;  %v1442_v5 = vld [vmem:[#allocation5 + $0x1c] ss:$12 sps:$4 sm:$0xff]   ;;  %v1444_v6 = vld [vmem:[#allocation5 + $0x18] ss:$12 sps:$4 sm:$0xff]  }
  0x6c   : > { %s313_s29 = scalar_select %p312_p11, %s1688_s25, 1  ;;  %416 = vmatprep.subr.bf16.mxu0 %v1439_v2  ;;  %v1445_v8 = vld [vmem:[%s1849_s12] sm:$0xff]   ;;  %vm403_vm1 = vcmask 261120   ;;  %v1629_v9 = vmov 0.0   ;;  %v1872_v10 = vld [vmem:[%s1849_s12 + $0x8] sm:$0xff]   ;;  %v1877_v11 = vld [vmem:[%s1849_s12 + $0x10] sm:$0xff]  }
  0x6d   : > { %417 = vmatpush1.bf16.msra.mxu0 %v1441_v3  ;;  %1336 = vmatprep.mubr.msk.bf16.mxu1 %vm403_vm1, %v1445_v8  ;;  %v1882_v12 = vld [vmem:[%s1849_s12 + $0x18] sm:$0xff]   ;;  %v1886_v14 = vshrl.u32 %v336_v13, 7  ;;  %v1888_v15 = vand.u32 127, %v336_v13  ;;  %v1915_v42 = vld [vmem:[%s2147_s3] sm:$0x7]  ;;  %s1281_s30 = sshll.u32 %s1845_s9, 3 }
  0x6e   : > { %s1282_s17 = sshll.u32 %s313_s29, 3  ;;  %418 = vmatprep.subr.bf16.mxu0 %v1442_v5  ;;  %s1313_s15 = sshll.u32 %s1688_s25, 7 }
  0x6f   : > { %s315_s27 = scalar_lea.vmem %s2144_s0, %s1282_s17  ;;  %v1892_v17 = vsub.s32 1, %v1886_v14  ;;  %v1895_v18 = vsub.s32 0, %v1886_v14  ;;  %v1901_v23 = vsub.s32 2, %v1886_v14  ;;  %v1904_v24 = vsub.s32 3, %v1886_v14  ;;  %s311_s14 = scalar_lea.vmem [#allocation8], %s1281_s30 }
  0x70   : > { %v626_v1 = vld [vmem:[%s315_s27] sm:$0xff]  ;;  %v673_v27 = vsub.s32 4, %v1886_v14  ;;  %v680_v28 = vsub.s32 5, %v1886_v14  ;;  %v687_v31 = vsub.s32 6, %v1886_v14  ;;  %v694_v32 = vsub.s32 7, %v1886_v14  ;;  %s1168_s7 = sshll.u32 %s311_s14, 4  ;;  %s2100_s17 = scalar_lea.hbm %s2150_s6, %s1313_s15  ;;  %s2102_s7 = int_to_ptr.vmem [resolvable:$true] %s1168_s7 }
  0x71   : > { %vm627_vm0 = vcmp.gt.s32.totalorder %v626_v1, 1  ;;  %419 = vmatpush1.bf16.msra.mxu0 %v1444_v6  ;;  %v1919_v44 = vrot.slane %v1915_v42, %v1895_v18  ;;  %v1923_v45 = vrot.slane %v1915_v42, %v1892_v17  ;;  %s1155_s18 = scalar_lea.sflag [#allocation4], %s1845_s9  ;;  %s1549_s25 = scalar_lea.vmem %s2102_s7, 128 }
  0x72   : > { %v1864_v4 = vsel %vm627_vm0, %v626_v1, 1  ;;  %1344 = vmatprep.subr.bf16.mxu0 %v1629_v9  ;;  %p1550_p0 = scmp.ne.s32.totalorder %s2102_s7, %s1549_s25  ;;  %p2164_p1 = scmp.ne.s32.totalorder %s2159_s8, 0 }
  0x73   : > { %v1301_v7 = vadd.s32 4294967295, %v1864_v4  ;;  %s1631_s16 = smov [#allocation8]  }
  0x74   : > { %1293 = vmatmul.mubr.msk.bf16.vlgmr.msra.gmra.mrb[0].mxu0 %vm403_vm1, %v1445_v8  ;;  %p1551_p3 = pnand %p1550_p0, %p2164_p1  ;;  %s1553_s27 = sshll.u32 %s1631_s16, 4  ;;  %s1554_s27 = int_to_ptr.vmem [resolvable:$false] %s1553_s27 }
  0x75   : > { %637 = vperm.xlu0 %1438, %v1301_v7   ;;  %458 = vmatprep.mubr.bf16.mxu0 %v1628_v0  ;;  %s1555_s19 = scalar_lea.vmem %s1554_s27, 256  ;;  %p1556_p9 = scmp.lt.s32.totalorder %s2102_s7, %s1554_s27 }
  0x76   : > { %p1552_p5 = pneg %p1551_p3  ;;  %p1557_p12 = scmp.lt.s32.totalorder %s1555_s19, %s1549_s25 }
  0x78   : > { %p1558_p2 = por %p1557_p12, %p1556_p9 }
  0x7a   : > { %p1559_p13 = pnand %p1558_p2, %p1552_p5 }
  0x7c   : > { %1294 = vmatmul.mubr.msk.bf16.gmra.mrb[4].mxu0 %vm403_vm1, %v1872_v10 }
  0x7d   : > { %468 = vmatprep.mubr.bf16.mxu0 %v1628_v0 }
  0x84   : > { %1295 = vmatmul.mubr.msk.bf16.gmra.mrb[8].mxu0 %vm403_vm1, %v1877_v11 }
  0x85   : > { %478 = vmatprep.mubr.bf16.mxu0 %v1628_v0 }
  0x8c   : > { %1296 = vmatmul.mubr.msk.bf16.gmra.mrb[12].mxu0 %vm403_vm1, %v1882_v12 }
  0xf4   : > { %v638_v16 = vpop.permute.xlu0 %637 }
  0xf5   : > { %vm639_vm2 = vcmp.eq.s32.totalorder %v1888_v15, %v638_v16 }
  0xf6   : > { %v1302_v19 = vsel %vm639_vm2, 1.0, %v1629_v9 }
  0xf7   : > { %v642_v20 = vmul.f32 0.17677669, %v1302_v19 }
  0xf9   : > { %v653_v21 = vrot.slane %v642_v20, %v1892_v17  ;;  %v646_v22 = vrot.slane %v642_v20, %v1895_v18  ;;  %v660_v25 = vrot.slane %v642_v20, %v1901_v23  ;;  %v667_v26 = vrot.slane %v642_v20, %v1904_v24 }
  0xfa   : > { %v674_v29 = vrot.slane %v642_v20, %v673_v27  ;;  %v681_v30 = vrot.slane %v642_v20, %v680_v28  ;;  %v688_v33 = vrot.slane %v642_v20, %v687_v31  ;;  %v695_v34 = vrot.slane %v642_v20, %v694_v32 }
  0xfb   : > { %655 = vbcast.lane.b32.xlu1 %v653_v21, 256  ;;  %648 = vbcast.lane.b32.xlu0 %v646_v22, 256 }
  0xff   : > { %662 = vbcast.lane.b32.xlu1 %v660_v25, 256  ;;  %669 = vbcast.lane.b32.xlu0 %v667_v26, 256 }
 0x103   : > { %676 = vbcast.lane.b32.xlu1 %v674_v29, 256  ;;  %683 = vbcast.lane.b32.xlu0 %v681_v30, 256 }
 0x107   : > { %690 = vbcast.lane.b32.xlu1 %v688_v33, 256  ;;  %697 = vbcast.lane.b32.xlu0 %v695_v34, 256 }
 0x147   : > { %v450_v35 = vpop.f32.mrb[0].mxu0 }
 0x148   : > { %v452_v36 = vpop.f32.mrb[1].mxu0  ;;  %v451_v48 = vadd.f32 %v450_v35, %v1919_v44 }
 0x149   : > { %v454_v37 = vpop.f32.mrb[2].mxu0  ;;  %v453_v50 = vadd.f32 %v452_v36, %v1923_v45 }
 0x14a   : > { %v456_v38 = vpop.f32.mrb[3].mxu0  ;;  %v455_v52 = vadd.f32 %v454_v37, %v1919_v44  ;;  %v578_v54 = vmul.f32 0.22916667, %v451_v48  ;;  %vm554_vm3 = vcmp.ge.f32.partialorder %v451_v48, 0.0 }
 0x14b   : > { %v457_v55 = vadd.f32 %v456_v38, %v1923_v45  ;;  %v579_v57 = vmul.f32 0.22916667, %v453_v50  ;;  %vm555_vm4 = vcmp.ge.f32.partialorder %v453_v50, 0.0 }
 0x14c   : > { %v581_v59 = vmul.f32 0.22916667, %v455_v52  ;;  %vm557_vm5 = vcmp.ge.f32.partialorder %v455_v52, 0.0  ;;  %v1935_v5 = vsel %vm554_vm3, %v451_v48, %v578_v54 }
 0x14d   : > { %v582_v1 = vmul.f32 0.22916667, %v457_v55  ;;  %vm558_vm7 = vcmp.ge.f32.partialorder %v457_v55, 0.0  ;;  %v603_v8 = vsel %vm555_vm4, %v453_v50, %v579_v57  ;;  %v755_v27 = vpack.c.bf16 %v1935_v5, %v1935_v5 }
 0x14e   : > { %v1939_v19 = vsel %vm557_vm5, %v455_v52, %v581_v59  ;;  %vm843_vm4 = vcmask 1041409   ;;  %vm845_vm5 = vcmask 1042434  }
 0x14f   : > { %v460_v39 = vpop.f32.mrb[4].mxu0  ;;  %v606_v26 = vsel %vm558_vm7, %v457_v55, %v582_v1  ;;  %v756_v33 = vpack.c.bf16 %v1939_v19, %v1939_v19  ;;  %vm849_vm7 = vcmask 1044484  }
 0x150   : > { %v462_v40 = vpop.f32.mrb[5].mxu0  ;;  %v461_v53 = vadd.f32 %v460_v39, %v1919_v44 }
 0x151   : > { %v464_v41 = vpop.f32.mrb[6].mxu0  ;;  %v463_v58 = vadd.f32 %v462_v40, %v1923_v45 }
 0x152   : > { %v466_v43 = vpop.f32.mrb[7].mxu0  ;;  %v465_v56 = vadd.f32 %v464_v41, %v1919_v44  ;;  %v584_v60 = vmul.f32 0.22916667, %v461_v53  ;;  %vm560_vm6 = vcmp.ge.f32.partialorder %v461_v53, 0.0 }
 0x153   : > { %v467_v63 = vadd.f32 %v466_v43, %v1923_v45  ;;  %v585_v6 = vmul.f32 0.22916667, %v463_v58  ;;  %vm561_vm9 = vcmp.ge.f32.partialorder %v463_v58, 0.0 }
 0x154   : > { %v587_v2 = vmul.f32 0.22916667, %v465_v56  ;;  %vm563_vm8 = vcmp.ge.f32.partialorder %v465_v56, 0.0  ;;  %v1942_v20 = vsel %vm560_vm6, %v461_v53, %v584_v60  ;;  %vm847_vm6 = vcmask 1043459  }
 0x155   : > { %v588_v21 = vmul.f32 0.22916667, %v467_v63  ;;  %vm564_vm11 = vcmp.ge.f32.partialorder %v467_v63, 0.0  ;;  %v609_v32 = vsel %vm561_vm9, %v463_v58, %v585_v6  ;;  %v757_v34 = vpack.c.bf16 %v1942_v20, %v1942_v20 }
 0x156   : > { %v1949_v28 = vsel %vm563_vm8, %v465_v56, %v587_v2  ;;  %vm851_vm8 = vcmask 1045509   ;;  %vm853_vm9 = vcmask 1046534  }
 0x157   : > { %v470_v46 = vpop.f32.mrb[8].mxu0  ;;  %v612_v40 = vsel %vm564_vm11, %v467_v63, %v588_v21  ;;  %v758_v41 = vpack.c.bf16 %v1949_v28, %v1949_v28  ;;  %vm859_vm11 = vcmask 64512  }
 0x158   : > { %v472_v47 = vpop.f32.mrb[9].mxu0  ;;  %v471_v61 = vadd.f32 %v470_v46, %v1919_v44 }
 0x159   : > { %v474_v49 = vpop.f32.mrb[10].mxu0  ;;  %v473_v7 = vadd.f32 %v472_v47, %v1923_v45 }
 0x15a   : > { %v476_v51 = vpop.f32.mrb[11].mxu0  ;;  %v590_v16 = vmul.f32 0.22916667, %v471_v61  ;;  %vm566_vm10 = vcmp.ge.f32.partialorder %v471_v61, 0.0  ;;  %v475_v22 = vadd.f32 %v474_v49, %v1919_v44 }
 0x15b   : > { %v477_v25 = vadd.f32 %v476_v51, %v1923_v45  ;;  %v591_v29 = vmul.f32 0.22916667, %v473_v7  ;;  %vm567_vm12 = vcmp.ge.f32.partialorder %v473_v7, 0.0 }
 0x15c   : > { %v1956_v37 = vsel %vm566_vm10, %v471_v61, %v590_v16  ;;  %v593_v38 = vmul.f32 0.22916667, %v475_v22  ;;  %vm569_vm13 = vcmp.ge.f32.partialorder %v475_v22, 0.0  ;;  %vm855_vm10 = vcmask 1047559  }
 0x15d   : > { %v594_v39 = vmul.f32 0.22916667, %v477_v25  ;;  %vm570_vm14 = vcmp.ge.f32.partialorder %v477_v25, 0.0  ;;  %v615_v51 = vsel %vm567_vm12, %v473_v7, %v591_v29  ;;  %v759_v52 = vpack.c.bf16 %v1956_v37, %v1956_v37 }
 0x15e   : > { %v1971_v60 = vsel %vm569_vm13, %v475_v22, %v593_v38 }
 0x15f   : > { %v480_v62 = vpop.f32.mrb[12].mxu0  ;;  %v618_v59 = vsel %vm570_vm14, %v477_v25, %v594_v39 }
 0x160   : > { %v482_v0 = vpop.f32.mrb[13].mxu0  ;;  %v1965_v57 = vadd.f32 %v480_v62, %v1919_v44 }
 0x161   : > { %v484_v3 = vpop.f32.mrb[14].mxu0  ;;  %v483_v47 = vadd.f32 %v482_v0, %v1923_v45 }
 0x162   : > { %v486_v13 = vpop.f32.mrb[15].mxu0  ;;  %v1968_v58 = vadd.f32 %v484_v3, %v1919_v44  ;;  %v1974_v44 = vmul.f32 0.22916667, %v1965_v57  ;;  %vm572_vm2 = vcmp.ge.f32.partialorder %v1965_v57, 0.0 }
 0x163   : > { %v487_v50 = vadd.f32 %v486_v13, %v1923_v45  ;;  %v597_v1 = vmul.f32 0.22916667, %v483_v47  ;;  %vm573_vm15 = vcmp.ge.f32.partialorder %v483_v47, 0.0 }
 0x164   : > { %v1977_v3 = vmul.f32 0.22916667, %v1968_v58  ;;  %vm575_vm3 = vcmp.ge.f32.partialorder %v1968_v58, 0.0  ;;  %v620_v20 = vsel %vm572_vm2, %v1965_v57, %v1974_v44 }
 0x165   : > { %v600_v2 = vmul.f32 0.22916667, %v487_v50  ;;  %vm576_vm0 = vcmp.ge.f32.partialorder %v487_v50, 0.0 }
 0x166   : > { %v623_v28 = vsel %vm575_vm3, %v1968_v58, %v1977_v3 }
 0x167   : > { %v624_v39 = vsel %vm576_vm0, %v487_v50, %v600_v2 }
 0x16d   : > { %v656_v30 = vpop.permute.xlu1 %655  ;;  %v649_v31 = vpop.permute.xlu0 %648 }
 0x16e   : > { %v700_v35 = vmul.f32 %v656_v30, %v606_v26  ;;  %v699_v36 = vmul.f32 %v649_v31, %v603_v8 }
 0x170   : > { %v713_v43 = vrot.slane %v700_v35, 4  ;;  %v707_v46 = vrot.slane %v699_v36, 4 }
 0x171   : > { %v663_v48 = vpop.permute.xlu1 %662  ;;  %v670_v49 = vpop.permute.xlu0 %669 }
 0x172   : > { %v714_v53 = vadd.f32 %v713_v43, %v700_v35  ;;  %v708_v54 = vadd.f32 %v707_v46, %v699_v36  ;;  %v701_v55 = vmul.f32 %v663_v48, %v609_v32  ;;  %v702_v56 = vmul.f32 %v670_v49, %v612_v40 }
 0x173   : > { %v621_v36 = vsel %vm573_vm15, %v483_v47, %v597_v1 }
 0x174   : > { %v715_v61 = vrot.slane %v714_v53, 2  ;;  %v709_v45 = vrot.slane %v708_v54, 2  ;;  %v719_v63 = vrot.slane %v701_v55, 4  ;;  %v725_v0 = vrot.slane %v702_v56, 4 }
 0x175   : > { %v677_v6 = vpop.permute.xlu1 %676  ;;  %v684_v7 = vpop.permute.xlu0 %683 }
 0x176   : > { %v716_v8 = vadd.f32 %v715_v61, %v714_v53  ;;  %v710_v62 = vadd.f32 %v709_v45, %v708_v54  ;;  %v720_v13 = vadd.f32 %v719_v63, %v701_v55  ;;  %v726_v16 = vadd.f32 %v725_v0, %v702_v56 }
 0x177   : > { %v703_v21 = vmul.f32 %v677_v6, %v615_v51  ;;  %v704_v22 = vmul.f32 %v684_v7, %v618_v59 }
 0x178   : > { %v721_v25 = vrot.slane %v720_v13, 2  ;;  %v727_v26 = vrot.slane %v726_v16, 2  ;;  %v717_v29 = vrot.slane %v716_v8, 1  ;;  %v711_v30 = vrot.slane %v710_v62, 1 }
 0x179   : > { %v731_v31 = vrot.slane %v703_v21, 4  ;;  %v737_v32 = vrot.slane %v704_v22, 4  ;;  %v691_v35 = vpop.permute.xlu1 %690  ;;  %v698_v38 = vpop.permute.xlu0 %697 }
 0x17a   : > { %v722_v40 = vadd.f32 %v721_v25, %v720_v13  ;;  %v728_v43 = vadd.f32 %v727_v26, %v726_v16  ;;  %v705_v46 = vmul.f32 %v691_v35, %v621_v36  ;;  %v706_v48 = vmul.f32 %v698_v38, %v624_v39 }
 0x17b   : > { %v732_v49 = vadd.f32 %v731_v31, %v703_v21  ;;  %v738_v51 = vadd.f32 %v737_v32, %v704_v22  ;;  %v718_v53 = vadd.f32 %v717_v29, %v716_v8  ;;  %v712_v54 = vadd.f32 %v711_v30, %v710_v62 }
 0x17c   : > { %v743_v55 = vrot.slane %v705_v46, 4  ;;  %v749_v56 = vrot.slane %v706_v48, 4  ;;  %v723_v59 = vrot.slane %v722_v40, 1  ;;  %v729_v61 = vrot.slane %v728_v43, 1 }
 0x17d   : > { %v733_v47 = vrot.slane %v732_v49, 2  ;;  %v739_v45 = vrot.slane %v738_v51, 2  ;;  %v764_v63 = vpack.c.bf16 %v718_v53, %v718_v53  ;;  %v763_v50 = vpack.c.bf16 %v712_v54, %v712_v54 }
 0x17e   : > { %v744_v0 = vadd.f32 %v743_v55, %v705_v46  ;;  %v750_v1 = vadd.f32 %v749_v56, %v706_v48  ;;  %v724_v2 = vadd.f32 %v723_v59, %v722_v40  ;;  %v730_v6 = vadd.f32 %v729_v61, %v728_v43 }
 0x17f   : > { %v734_v7 = vadd.f32 %v733_v47, %v732_v49  ;;  %v740_v13 = vadd.f32 %v739_v45, %v738_v51  ;;  %v772_v16 = vmul.bf16 %v764_v63, %v756_v33  ;;  %v771_v8 = vmul.bf16 %v763_v50, %v755_v27 }
 0x180   : > { %v745_v62 = vrot.slane %v744_v0, 2  ;;  %v751_v21 = vrot.slane %v750_v1, 2  ;;  %v765_v22 = vpack.c.bf16 %v724_v2, %v724_v2  ;;  %v766_v25 = vpack.c.bf16 %v730_v6, %v730_v6 }
 0x181   : > { %v780_v26 = vunpack.c.l.bf16 %v772_v16  ;;  %v779_v29 = vunpack.c.l.bf16 %v771_v8  ;;  %v735_v30 = vrot.slane %v734_v7, 1  ;;  %v741_v31 = vrot.slane %v740_v13, 1 }
 0x182   : > { %v746_v32 = vadd.f32 %v745_v62, %v744_v0  ;;  %v752_v35 = vadd.f32 %v751_v21, %v750_v1  ;;  %v773_v36 = vmul.bf16 %v765_v22, %v757_v34  ;;  %v774_v19 = vmul.bf16 %v766_v25, %v758_v41 }
 0x183   : > { %789 = vadd.xlane.f32.xlu0 %v780_v26  ;;  %787 = vadd.xlane.f32.xlu1 %v779_v29  ;;  %v736_v5 = vadd.f32 %v735_v30, %v734_v7  ;;  %v742_v27 = vadd.f32 %v741_v31, %v740_v13  ;;  %v760_v33 = vpack.c.bf16 %v1971_v60, %v1971_v60 }
 0x184   : > { %v781_v38 = vunpack.c.l.bf16 %v773_v36  ;;  %v782_v39 = vunpack.c.l.bf16 %v774_v19  ;;  %v747_v40 = vrot.slane %v746_v32, 1  ;;  %v753_v43 = vrot.slane %v752_v35, 1  ;;  %v1449_v36 = vld [vmem:[#allocation5 + $0x8] ss:$12 sps:$4 sm:$0xff]   ;;  %v1450_v19 = vld [vmem:[#allocation5 + $0x20] ss:$12 sps:$4 sm:$0xff]  }
 0x185   : > { %v767_v46 = vpack.c.bf16 %v736_v5, %v736_v5  ;;  %v768_v48 = vpack.c.bf16 %v742_v27, %v742_v27  ;;  %v761_v51 = vpack.c.bf16 %v620_v20, %v620_v20  ;;  %v762_v54 = vpack.c.bf16 %v623_v28, %v623_v28  ;;  %1332 = vmatprep.subr.bf16.mxu1 %v1449_v36 }
 0x186   : > { %v748_v34 = vadd.f32 %v747_v40, %v746_v32  ;;  %v754_v41 = vadd.f32 %v753_v43, %v752_v35  ;;  %1333 = vmatpush3.bf16.msra.mxu1 %v1449_v36 }
 0x187   : > { %791 = vadd.xlane.f32.xlu0 %v781_v38  ;;  %793 = vadd.xlane.f32.xlu1 %v782_v39  ;;  %v775_v60 = vmul.bf16 %v767_v46, %v759_v52  ;;  %v776_v49 = vmul.bf16 %v768_v48, %v760_v33  ;;  %v813_v52 = vsub.s32 %v1888_v15, %v1886_v14 }
 0x188   : > { %v769_v53 = vpack.c.bf16 %v748_v34, %v748_v34  ;;  %v770_v55 = vpack.c.bf16 %v754_v41, %v754_v41  ;;  %1334 = vmatprep.subr.bf16.mxu1 %v1450_v19  ;;  %v347_v39 = vrot.slane %v1915_v42, %v1901_v23 }
 0x189   : > { %v783_v56 = vunpack.c.l.bf16 %v775_v60  ;;  %v784_v57 = vunpack.c.l.bf16 %v776_v49 }
 0x18a   : > { %v777_v44 = vmul.bf16 %v769_v53, %v761_v51  ;;  %v778_v59 = vmul.bf16 %v770_v55, %v762_v54  ;;  %1335 = vmatpush3.bf16.msra.mxu1 %v1450_v19 }
 0x18b   : > { %795 = vadd.xlane.f32.xlu0 %v783_v56  ;;  %797 = vadd.xlane.f32.xlu1 %v784_v57  ;;  %v1451_v56 = vld [vmem:[#allocation7] sm:$0xff]  }
 0x18c   : > { %v785_v58 = vunpack.c.l.bf16 %v777_v44  ;;  %v786_v3 = vunpack.c.l.bf16 %v778_v59  ;;  %1345 = vmatpush3.bf16.msra.mxu0 %v1451_v56  ;;  %v1452_v59 = vld [vmem:[#allocation7 + $0x8] sm:$0xff]  }
 0x18d   : > { %1337 = vmatmul.mubr.msk.bf16.vlgmr.msra.gmra.mrb[0].mxu1 %vm403_vm1, %v1872_v10  ;;  %1346 = vmatprep.subr.bf16.mxu0 %v1629_v9 }
 0x18e   : > { %1340 = vmatprep.mubr.msk.bf16.mxu1 %vm403_vm1, %v1877_v11 }
 0x18f   : > { %799 = vadd.xlane.f32.xlu0 %v785_v58  ;;  %801 = vadd.xlane.f32.xlu1 %v786_v3 }
 0x190   : > { %1347 = vmatpush3.bf16.msra.mxu0 %v1452_v59 }
 0x191   : > { %1348 = vmatprep.subr.bf16.mxu0 %v1629_v9 }
 0x195   : > { %1341 = vmatmul.mubr.msk.bf16.gmra.mrb[4].mxu1 %vm403_vm1, %v1882_v12  ;;  %vm1630_vm1 = vmmov 0  }
 0x196   : > { %1360 = vmatprep.mubr.msk.bf16.mxu0 %vm1630_vm1, %v1629_v9 }
 0x1a5   : > { %632 = vperm.xlu0 %1438, %v1864_v4  }
 0x210   : > { %v790_v61 = vpop.xlane.xlu0 %789  ;;  %v788_v37 = vpop.xlane.xlu1 %787 }
 0x211   : > { %v818_v63 = vrot.slane %v790_v61, %v813_v52  ;;  %v814_v50 = vrot.slane %v788_v37, %v813_v52 }
 0x213   : > { %v844_v6 = vsel %vm843_vm4, %v818_v63, %v814_v50  ;;  %v1454_v50 = vld [vmem:[#allocation7 + $0x18] sm:$0xff]  }
 0x214   : > { %v792_v47 = vpop.xlane.xlu0 %791  ;;  %v794_v45 = vpop.xlane.xlu1 %793 }
 0x215   : > { %v822_v0 = vrot.slane %v792_v47, %v813_v52  ;;  %v826_v7 = vrot.slane %v794_v45, %v813_v52  ;;  %v1453_v47 = vld [vmem:[#allocation7 + $0x10] sm:$0xff]  }
 0x216   : > { %1349 = vmatpush3.bf16.msra.mxu0 %v1453_v47 }
 0x217   : > { %v846_v13 = vsel %vm845_vm5, %v822_v0, %v844_v6  ;;  %1350 = vmatprep.subr.bf16.mxu0 %v1629_v9  ;;  %v1456_v6 = vld [vmem:[#allocation7 + $0x28] sm:$0xff]  }
 0x218   : > { %v796_v1 = vpop.xlane.xlu0 %795  ;;  %v798_v2 = vpop.xlane.xlu1 %797  ;;  %v848_v14 = vsel %vm847_vm6, %v826_v7, %v846_v13  ;;  %v1458_v7 = vld [vmem:[#allocation7 + $0x38] sm:$0xff]  }
 0x219   : > { %v830_v4 = vrot.slane %v796_v1, %v813_v52  ;;  %v834_v8 = vrot.slane %v798_v2, %v813_v52  ;;  %v1455_v2 = vld [vmem:[#allocation7 + $0x20] sm:$0xff]  }
 0x21a   : > { %1351 = vmatpush3.bf16.msra.mxu0 %v1454_v50 }
 0x21b   : > { %v850_v62 = vsel %vm849_vm7, %v830_v4, %v848_v14  ;;  %1352 = vmatprep.subr.bf16.mxu0 %v1629_v9 }
 0x21c   : > { %v800_v16 = vpop.xlane.xlu0 %799  ;;  %v802_v22 = vpop.xlane.xlu1 %801  ;;  %v852_v25 = vsel %vm851_vm8, %v834_v8, %v850_v62 }
 0x21d   : > { %v838_v21 = vrot.slane %v800_v16, %v813_v52  ;;  %v842_v26 = vrot.slane %v802_v22, %v813_v52 }
 0x21e   : > { %1353 = vmatpush3.bf16.msra.mxu0 %v1455_v2 }
 0x21f   : > { %v854_v29 = vsel %vm853_vm9, %v838_v21, %v852_v25  ;;  %1354 = vmatprep.subr.bf16.mxu0 %v1629_v9 }
 0x220   : > { %v856_v31 = vsel %vm855_vm10, %v842_v26, %v854_v29 }
 0x222   : > { %1355 = vmatpush3.bf16.msra.mxu0 %v1456_v6 }
 0x223   : > { %1356 = vmatprep.subr.bf16.mxu0 %v1629_v9 }
 0x224   : > { %v633_v30 = vpop.permute.xlu0 %632 }
 0x225   : > { %vm634_vm12 = vcmp.lt.s32.totalorder %v1888_v15, %v633_v30 }
 0x226   : > { %v858_v32 = vsel %vm634_vm12, %v856_v31, -inf }
 0x227   : > { %v860_v35 = vsel %vm859_vm11, %v858_v32, -inf }
 0x228   : > { %861 = vmax.xlane.f32.xlu1 %v860_v35 }
 0x260   : > { %v1338_v40 = vpop.f32.mrb[0].mxu1 }
 0x261   : > { %v2029_v43 = vadd.f32 %v1338_v40, %v347_v39  ;;  %v523_v10 = vpop.f32.mrb[1].mxu1 }
 0x262   : > { %v2031_v46 = vadd.f32 %v523_v10, %v347_v39  ;;  %v1339_v11 = vpop.f32.mrb[2].mxu1 }
 0x263   : > { %v2033_v48 = vadd.f32 %v1339_v11, %v347_v39  ;;  %v526_v12 = vpop.f32.mrb[3].mxu1  ;;  %vm562_vm13 = vcmp.ge.f32.partialorder %v2029_v43, 0.0 }
 0x264   : > { %v2035_v20 = vadd.f32 %v526_v12, %v347_v39  ;;  %v580_v13 = vmul.f32 0.22916667, %v2031_v46  ;;  %vm556_vm14 = vcmp.ge.f32.partialorder %v2031_v46, 0.0 }
 0x265   : > { %v589_v4 = vmul.f32 0.22916667, %v2033_v48  ;;  %vm565_vm0 = vcmp.ge.f32.partialorder %v2033_v48, 0.0 }
 0x266   : > { %v583_v16 = vmul.f32 0.22916667, %v2035_v20  ;;  %v604_v8 = vsel %vm556_vm14, %v2031_v46, %v580_v13  ;;  %vm559_vm15 = vcmp.ge.f32.partialorder %v2035_v20, 0.0 }
 0x267   : > { %v871_v62 = vpack.c.bf16 %v604_v8, %v604_v8  ;;  %v613_v30 = vsel %vm565_vm0, %v2033_v48, %v589_v4 }
 0x268   : > { %v1342_v28 = vpop.f32.mrb[4].mxu1  ;;  %v607_v29 = vsel %vm559_vm15, %v2035_v20, %v583_v16 }
 0x269   : > { %v2037_v34 = vadd.f32 %v1342_v28, %v347_v39  ;;  %v539_v41 = vpop.f32.mrb[5].mxu1 }
 0x26a   : > { %v2039_v60 = vadd.f32 %v539_v41, %v347_v39  ;;  %v1343_v49 = vpop.f32.mrb[6].mxu1 }
 0x26b   : > { %v2041_v42 = vadd.f32 %v1343_v49, %v347_v39  ;;  %v542_v51 = vpop.f32.mrb[7].mxu1  ;;  %v598_v35 = vmul.f32 0.22916667, %v2037_v34 }
 0x26c   : > { %v2043_v53 = vadd.f32 %v542_v51, %v347_v39  ;;  %v592_v21 = vmul.f32 0.22916667, %v2039_v60  ;;  %vm568_vm2 = vcmp.ge.f32.partialorder %v2039_v60, 0.0 }
 0x26d   : > { %v601_v36 = vmul.f32 0.22916667, %v2041_v42  ;;  %vm577_vm12 = vcmp.ge.f32.partialorder %v2041_v42, 0.0 }
 0x26e   : > { %v595_v22 = vmul.f32 0.22916667, %v2043_v53  ;;  %vm571_vm3 = vcmp.ge.f32.partialorder %v2043_v53, 0.0  ;;  %v616_v39 = vsel %vm568_vm2, %v2039_v60, %v592_v21 }
 0x26f   : > { %v875_v41 = vpack.c.bf16 %v616_v39, %v616_v39 }
 0x270   : > { %v619_v40 = vsel %vm571_vm3, %v2043_v53, %v595_v22  ;;  %v625_v53 = vsel %vm577_vm12, %v2041_v42, %v601_v36 }
 0x271   : > { %v876_v51 = vpack.c.bf16 %v619_v40, %v619_v40 }
 0x2b5   : > { %v862_v15 = vpop.xlane.xlu1 %861 }
 0x2b6   : > { %v863_v5 = vsub.f32 %v858_v32, %v862_v15 }
 0x2b8   : > { %v864_v27 = vmul.f32 1.442695, %v863_v5  ;;  %v872_v5 = vpack.c.bf16 %v607_v29, %v607_v29 }
 0x2ba   : > { %1459 = vpow2.f32 %v864_v27  ;;  %v874_v27 = vpack.c.bf16 %v613_v30, %v613_v30 }
 0x2c4   : > { %v1460_v33 = vpop.eup %1459 }
 0x2c5   : > { %v866_v38 = vsel %vm859_vm11, %v1460_v33, 0.0  ;;  %vm574_vm11 = vcmp.ge.f32.partialorder %v2037_v34, 0.0 }
 0x2c6   : > { %867 = vadd.xlane.f32.xlu1 %v866_v38  ;;  %v622_v60 = vsel %vm574_vm11, %v2037_v34, %v598_v35 }
 0x353   : > { %v868_v54 = vpop.xlane.xlu1 %867 }
 0x354   : > { %1461 = vrcp.f32 %v868_v54 }
 0x35e   : > { %v1462_v55 = vpop.eup %1461 }
 0x35f   : > { %v870_v57 = vmul.f32 %v1462_v55, %v1460_v33 }
 0x361   : > { %v879_v44 = vpack.c.bf16 %v870_v57, %v870_v57 }
 0x363   : > { %v881_v58 = vpack.i.b16 %v879_v44, %v879_v44  ;;  %v890_v3 = vshrl.u32 %v879_v44, 16 }
 0x365   : > { %v903_v61 = vrot.slane %v881_v58, %v1892_v17  ;;  %v886_v37 = vrot.slane %v881_v58, %v1895_v18  ;;  %v891_v52 = vpack.i.b16 %v890_v3, %v890_v3  ;;  %v917_v0 = vrot.slane %v881_v58, %v1901_v23 }
 0x367   : > { %905 = vbcast.lane.c.b16.xlu0 %v903_v61, 256  ;;  %888 = vbcast.lane.c.b16.xlu1 %v886_v37, 256  ;;  %v896_v45 = vrot.slane %v891_v52, %v1895_v18  ;;  %v910_v63 = vrot.slane %v891_v52, %v1892_v17  ;;  %v924_v1 = vrot.slane %v891_v52, %v1901_v23  ;;  %v1457_v23 = vld [vmem:[#allocation7 + $0x30] sm:$0xff]  }
 0x368   : > { %v931_v18 = vrot.slane %v881_v58, %v1904_v24  ;;  %v938_v17 = vrot.slane %v891_v52, %v1904_v24  ;;  %1357 = vmatpush3.bf16.msra.mxu0 %v1457_v23  ;;  %v586_v24 = vmul.f32 0.22916667, %v2029_v43 }
 0x369   : > { %1358 = vmatprep.subr.bf16.mxu0 %v1629_v9 }
 0x36a   : > { %v610_v14 = vsel %vm562_vm13, %v2029_v43, %v586_v24 }
 0x36b   : > { %898 = vbcast.lane.c.b16.xlu0 %v896_v45, 256  ;;  %912 = vbcast.lane.c.b16.xlu1 %v910_v63, 256  ;;  %v873_v9 = vpack.c.bf16 %v610_v14, %v610_v14  ;;  %v877_v63 = vpack.c.bf16 %v622_v60, %v622_v60 }
 0x36c   : > { %1359 = vmatpush3.bf16.msra.mxu0 %v1458_v7 }
 0x36f   : > { %919 = vbcast.lane.c.b16.xlu0 %v917_v0, 256  ;;  %926 = vbcast.lane.c.b16.xlu1 %v924_v1, 256  ;;  %v878_v0 = vpack.c.bf16 %v625_v53, %v625_v53 }
 0x373   : > { %933 = vbcast.lane.c.b16.xlu0 %v931_v18, 256  ;;  %940 = vbcast.lane.c.b16.xlu1 %v938_v17, 256 }
 0x3d9   : > { %v906_v25 = vpop.permute.xlu0 %905  ;;  %v889_v26 = vpop.permute.xlu1 %888 }
 0x3da   : > { %v944_v31 = vmul.bf16 %v906_v25, %v873_v9  ;;  %v942_v32 = vmul.bf16 %v889_v26, %v871_v62 }
 0x3dc   : > { %v952_v19 = vunpack.c.l.bf16 %v944_v31  ;;  %v950_v15 = vunpack.c.l.bf16 %v942_v32 }
 0x3dd   : > { %v899_v33 = vpop.permute.xlu0 %898  ;;  %v913_v38 = vpop.permute.xlu1 %912 }
 0x3de   : > { %v970_v43 = vrot.slane %v952_v19, 4  ;;  %v958_v10 = vrot.slane %v950_v15, 4  ;;  %v943_v46 = vmul.bf16 %v899_v33, %v872_v5  ;;  %v945_v11 = vmul.bf16 %v913_v38, %v874_v27 }
 0x3e0   : > { %v971_v48 = vadd.f32 %v970_v43, %v952_v19  ;;  %v959_v12 = vadd.f32 %v958_v10, %v950_v15  ;;  %v951_v20 = vunpack.c.l.bf16 %v943_v46  ;;  %v953_v28 = vunpack.c.l.bf16 %v945_v11 }
 0x3e1   : > { %v920_v49 = vpop.permute.xlu0 %919  ;;  %v927_v54 = vpop.permute.xlu1 %926 }
 0x3e2   : > { %v972_v55 = vrot.slane %v971_v48, 2  ;;  %v960_v56 = vrot.slane %v959_v12, 2  ;;  %v964_v57 = vrot.slane %v951_v20, 4  ;;  %v976_v44 = vrot.slane %v953_v28, 4 }
 0x3e3   : > { %v946_v59 = vmul.bf16 %v920_v49, %v875_v41  ;;  %v947_v58 = vmul.bf16 %v927_v54, %v876_v51 }
 0x3e4   : > { %v973_v3 = vadd.f32 %v972_v55, %v971_v48  ;;  %v961_v61 = vadd.f32 %v960_v56, %v959_v12  ;;  %v965_v37 = vadd.f32 %v964_v57, %v951_v20  ;;  %v977_v52 = vadd.f32 %v976_v44, %v953_v28 }
 0x3e5   : > { %v954_v47 = vunpack.c.l.bf16 %v946_v59  ;;  %v955_v45 = vunpack.c.l.bf16 %v947_v58  ;;  %v934_v50 = vpop.permute.xlu0 %933  ;;  %v941_v1 = vpop.permute.xlu1 %940 }
 0x3e6   : > { %v974_v2 = vrot.slane %v973_v3, 1  ;;  %v962_v34 = vrot.slane %v961_v61, 1  ;;  %v966_v18 = vrot.slane %v965_v37, 2  ;;  %v978_v42 = vrot.slane %v977_v52, 2 }
 0x3e7   : > { %v982_v17 = vrot.slane %v954_v47, 4  ;;  %v988_v6 = vrot.slane %v955_v45, 4  ;;  %v948_v23 = vmul.bf16 %v934_v50, %v877_v63  ;;  %v949_v7 = vmul.bf16 %v941_v1, %v878_v0 }
 0x3e8   : > { %v975_v24 = vadd.f32 %v974_v2, %v973_v3  ;;  %v963_v13 = vadd.f32 %v962_v34, %v961_v61  ;;  %v967_v4 = vadd.f32 %v966_v18, %v965_v37  ;;  %v979_v16 = vadd.f32 %v978_v42, %v977_v52  ;;  %v1303_v2 = vld [vmem:[%s2149_s5] ss:$0 sm:$0xff] }
 0x3e9   : > { %v983_v14 = vadd.f32 %v982_v17, %v954_v47  ;;  %v989_v8 = vadd.f32 %v988_v6, %v955_v45  ;;  %v956_v9 = vunpack.c.l.bf16 %v948_v23  ;;  %v957_v62 = vunpack.c.l.bf16 %v949_v7 }
 0x3ea   : > { %v968_v21 = vrot.slane %v967_v4, 1  ;;  %v980_v22 = vrot.slane %v979_v16, 1  ;;  %v1008_v31 = vpack.c.bf16 %v975_v24, %v975_v24  ;;  %v1006_v32 = vpack.c.bf16 %v963_v13, %v963_v13 }
 0x3eb   : > { %v984_v25 = vrot.slane %v983_v14, 2  ;;  %v990_v26 = vrot.slane %v989_v8, 2  ;;  %v994_v29 = vrot.slane %v956_v9, 4  ;;  %v1000_v30 = vrot.slane %v957_v62, 4 }
 0x3ec   : > { %v969_v35 = vadd.f32 %v968_v21, %v967_v4  ;;  %v981_v36 = vadd.f32 %v980_v22, %v979_v16  ;;  %v1047_v46 = vunpack.c.l.b16 %v1008_v31  ;;  %v1045_v11 = vunpack.c.l.b16 %v1006_v32 }
 0x3ed   : > { %v985_v19 = vadd.f32 %v984_v25, %v983_v14  ;;  %v991_v15 = vadd.f32 %v990_v26, %v989_v8  ;;  %v995_v5 = vadd.f32 %v994_v29, %v956_v9  ;;  %v1001_v27 = vadd.f32 %v1000_v30, %v957_v62 }
 0x3ee   : > { %v1007_v33 = vpack.c.bf16 %v969_v35, %v969_v35  ;;  %v1009_v38 = vpack.c.bf16 %v981_v36, %v981_v36 }
 0x3ef   : > { %v986_v39 = vrot.slane %v985_v19, 1  ;;  %v992_v40 = vrot.slane %v991_v15, 1  ;;  %v996_v43 = vrot.slane %v995_v5, 2  ;;  %v1002_v10 = vrot.slane %v1001_v27, 2 }
 0x3f0   : > { %v1046_v48 = vunpack.c.l.b16 %v1007_v33  ;;  %v1048_v51 = vunpack.c.l.b16 %v1009_v38 }
 0x3f1   : > { %v987_v12 = vadd.f32 %v986_v39, %v985_v19  ;;  %v993_v20 = vadd.f32 %v992_v40, %v991_v15  ;;  %v997_v28 = vadd.f32 %v996_v43, %v995_v5  ;;  %v1003_v41 = vadd.f32 %v1002_v10, %v1001_v27 }
 0x3f2   : > { %v1053_v49 = vsel %vm843_vm4, %v1046_v48, %v1045_v11 }
 0x3f3   : > { %v1054_v54 = vsel %vm845_vm5, %v1047_v46, %v1053_v49  ;;  %v1010_v60 = vpack.c.bf16 %v987_v12, %v987_v12  ;;  %v1011_v53 = vpack.c.bf16 %v993_v20, %v993_v20  ;;  %v998_v55 = vrot.slane %v997_v28, 1 }
 0x3f4   : > { %v1055_v56 = vsel %vm847_vm6, %v1048_v51, %v1054_v54  ;;  %v1004_v57 = vrot.slane %v1003_v41, 1 }
 0x3f5   : > { %v1049_v44 = vunpack.c.l.b16 %v1010_v60  ;;  %v1050_v59 = vunpack.c.l.b16 %v1011_v53  ;;  %v999_v58 = vadd.f32 %v998_v55, %v997_v28 }
 0x3f6   : > { %v1005_v3 = vadd.f32 %v1004_v57, %v1003_v41 }
 0x3f7   : > { %v1056_v61 = vsel %vm849_vm7, %v1049_v44, %v1055_v56  ;;  %v1012_v37 = vpack.c.bf16 %v999_v58, %v999_v58 }
 0x3f8   : > { %v1057_v52 = vsel %vm851_vm8, %v1050_v59, %v1056_v61  ;;  %v1013_v47 = vpack.c.bf16 %v1005_v3, %v1005_v3 }
 0x3f9   : > { %v1051_v45 = vunpack.c.l.b16 %v1012_v37 }
 0x3fa   : > { %v1052_v63 = vunpack.c.l.b16 %v1013_v47 }
 0x3fb   : > { %v1058_v50 = vsel %vm853_vm9, %v1051_v45, %v1057_v52 }
 0x3fc   : > { %v1059_v0 = vsel %vm855_vm10, %v1052_v63, %v1058_v50 }
 0x3fd   : > { %v1060_v1 = vpack.c.b16 %v1059_v0, %v1059_v0 }
 0x3ff   : > { %1361 = vmatmul.mubr.bf16.vlgmr.msra.gmra.mrb[16].mxu0 %v1060_v1 }
 0x4d2   : > { %v1144_v34 = vpop.f32.mrb[16].mxu0 }
 0x4d3   : > { %v1145_v18 = vadd.f32 %v1303_v2, %v1144_v34  ;;  %v1362_v42 = vpop.f32.mrb[17].mxu0 }
 0x4d4   : > { %v1147_v17 = vpop.f32.mrb[18].mxu0 }
 0x4d5   : > { %vm1150_vm4 = vcmp.ge.f32.partialorder %v1145_v18, 0.0  ;;  %v1151_v6 = vmul.f32 0.22916667, %v1145_v18  ;;  %v1363_v23 = vpop.f32.mrb[19].mxu0 }
 0x4d7   : > { %v1152_v7 = vsel %vm1150_vm4, %v1145_v18, %v1151_v6 }
 0x4d8   : > { %1153 = vst [vmem:[%s311_s14] sm:$0xff] %v1152_v7 }
 0x4d9   : > { %1562 = shalt.err (!%p1559_p13)
}
 0x4da   : > { %s1563_s9 = scalar_lea.hbm %s2100_s17, 128  ;;  %s1567_s13 = scalar_lea.hbm %s2150_s6, 256 }
 0x4db   : > { %p1564_p6 = scmp.ne.s32.totalorder %s2100_s17, %s1563_s9  ;;  %p1568_p7 = scmp.lt.u32.totalorder %s2100_s17, %s2150_s6 }
 0x4dc   : > { %p1569_p8 = scmp.lt.u32.totalorder %s1567_s13, %s1563_s9  ;;  %p1571_p0 = scmp.lt.u32.totalorder %s1563_s9, %s2100_s17 }
 0x4dd   : > { %p1565_p10 = pnand %p1564_p6, %p2164_p1 }
 0x4de   : > { %p1570_p11 = por %p1569_p8, %p1568_p7 }
 0x4df   : > { %p1566_p4 = pneg %p1565_p10 }
 0x4e0   : > { %p1572_p3 = por %p1571_p0, %p1570_p11 }
 0x4e2   : > { %p1573_p5 = pnand %p1572_p3, %p1566_p4 }
 0x4e4   : > { %1576 = shalt.err (!%p1573_p5)
}
 0x4e5   : > { %1374 = dma.vmem_to_hbm [thread:$0]  (%p2164_p1), %s2102_s7, 128, %s2100_s17, %s1155_s18  }
 0x4e6 PF: > { %s1180_s14 = sand.u32 1, %s1607_s21   ;;  %p2165_p9 = scmp.ne.s32.totalorder %s2155_s28, 0 }
 0x4e7   : > { %p2166_p12 = scmp.ge.s32.totalorder %s1619_s24, 2  ;;  %s1181_s12 = scalar_lea.sflag [#allocation4], %s1180_s14 }
 0x4e9   : > { %p1388_p2 = pnand %p2166_p12, %p2165_p9 }
 0x4eb   : > { %1602 = dma.done.wait (!%p1388_p2), %s1181_s12, 128  }
 0x4ec   : > { %1604 = vsyncadd (!%p1388_p2), %s1181_s12, 4294967168  ;;  %p20_p13 = scmp.ge.s32.totalorder %s1780_s26, 4   ;;  %s2167_s21 = smov %s1611_s22 }
 0x4ed   : > { %s2168_s22 = smov %s1615_s23  ;;  %s2169_s23 = smov %s1789_s11 }
 0x4ee   : > { %s2170_s24 = smov %s1780_s26  ;;  %22 = sbr.rel (!%p20_p13) target bundleno = 6 (0x6), region = 100 }
 0x4f5   :  { %1186 = vsyncpa [#allocation3], 1 }
 0x4f6   :  { %1188 = vsyncpa [#allocation3 + $0x1], 1 }
 0x4f7   :  { %1189 = vsyncpa [#allocation6], 1 }
 0x4f8   :  { %1190 = vsyncpa [#allocation4], 1 }
 0x4f9   :  { %1192 = vsyncpa [#allocation4 + $0x1], 1 }

</bundles_post_ra>
